<compile_context>
chip_gen: v6e
topology: v6e:2x2x1
jax: 0.10.0
libtpu: 0.0.40
codegen_flags: <defaults>
</compile_context>

<pallas_src>
import math

import jax
import jax.numpy as jnp
from jax.experimental import pallas as pl
from jax.experimental.pallas import tpu as pltpu


def _build_pe_table(d_model: int, max_len: int = 500) -> jnp.ndarray:
    """Sinusoidal positional-encoding table, shape (max_len, d_model), f32.

    Pure buffer setup (mirrors torch __init__) — stays in plain JAX.
    """
    pos = jnp.arange(max_len, dtype=jnp.float32)[:, None]               # (max_len, 1)
    div = jnp.exp(
        jnp.arange(0, d_model, 2, dtype=jnp.float32) * (-math.log(10000.0) / d_model)
    )                                                                    # (ceil(d/2),)
    ang = pos * div                                                      # (max_len, ceil(d/2))
    pe = jnp.zeros((max_len, d_model), dtype=jnp.float32)
    pe = pe.at[:, 0::2].set(jnp.sin(ang))
    pe = pe.at[:, 1::2].set(jnp.cos(ang)[:, : d_model // 2])
    return pe


def _pe_add_kernel(x_ref, pe_ref, o_ref):
    # x_ref / o_ref: (bB, tR, 128) block covering bB batch elements.
    # pe_ref:        (tR, 128)     shared positional-encoding tile.
    o_ref[...] = x_ref[...] + pe_ref[...][None, :, :]


def _round_up(x: int, m: int) -> int:
    return -(-x // m) * m


def _choose_tiles(B: int, R: int, itemsize: int):
    """Pick (batch group bB, row tile tR) for the lane-dense (B, R, 128) slab."""
    pack = 32 // itemsize                       # packed sublanes: 8 f32 / 16 bf16 / 32 i8
    # Largest divisor of B that is <= 8 -> batch blocks always evenly divide B.
    bB = 1
    for cand in range(min(B, 8), 0, -1):
        if B % cand == 0:
            bB = cand
            break
    # ~4 MiB per x block (measured: 2-4 MiB tiles sit at ~86% of HBM roofline).
    target_block_bytes = 4 << 20
    tR = max(pack, (target_block_bytes // (bB * 128 * itemsize)) // pack * pack)
    if tR >= R:
        tR = R                                  # full row extent: always a legal block dim
    # v7x megacore guard: if the batch grid axis has a single step, keep >= 2
    # row tiles (when R permits) so both TensorCores get work.
    if B // bB == 1 and tR >= R and R >= 2 * pack:
        tR = _round_up(-(-R // 2), pack)
    return bB, tR


def positional_encoding(x: jnp.ndarray, pe_table: jnp.ndarray, *, donate_x: bool = False) -> jnp.ndarray:
    """x: (B, S, D). Returns x + pe_table[:S] broadcast over batch."""
    B, S, D = x.shape
    max_len = pe_table.shape[0]
    if S > max_len:
        raise ValueError(f"sequence length {S} exceeds positional-encoding max_len {max_len}")

    # Cast pe to x.dtype outside the kernel (halves its DMA/VMEM cost for bf16
    # and avoids per-element casts on the VPU). NOTE: for sub-f32 x this does
    # the add in x.dtype, whereas PyTorch would promote to f32 — acceptable
    # numerics for positional encodings.
    pe = pe_table[:S, :].astype(x.dtype)                                 # (S, D)

    F = S * D
    itemsize = jnp.dtype(x.dtype).itemsize
    F_pad = _round_up(F, 128)
    R = F_pad // 128

    # ---- lane-dense slab: view / pad the (S, D) plane as (R, 128) ----
    x_flat = x.reshape(B, F)
    pe_flat = pe.reshape(F)
    if F_pad != F:
        # TODO(synk): the pad costs an extra XLA read+write of x; at a real
        # call site prefer S*D % 128 == 0 (or fuse the add upstream).
        x_flat = jnp.pad(x_flat, ((0, 0), (0, F_pad - F)))
        pe_flat = jnp.pad(pe_flat, ((0, F_pad - F),))
    x_r = x_flat.reshape(B, R, 128)
    pe_r = pe_flat.reshape(R, 128)

    bB, tR = _choose_tiles(B, R, itemsize)
    # Row tiles outer, batch inner: pe's block index is constant along the
    # inner axis, so it stays VMEM-resident across the batch loop.
    grid = (pl.cdiv(R, tR), B // bB)

    # Double-buffered x, out, pe blocks; set the VMEM limit explicitly with
    # headroom, capped below v7x's 64 MiB physical VMEM per TensorCore.
    blk_x_bytes = bB * tR * 128 * itemsize
    blk_pe_bytes = tR * 128 * itemsize
    live_bytes = 2 * (2 * blk_x_bytes + blk_pe_bytes)
    vmem_limit = int(min(max(2 * live_bytes, 32 << 20), 48 << 20))

    alias = {0: 0} if (donate_x and F_pad == F) else {}

    out = pl.pallas_call(
        _pe_add_kernel,
        out_shape=jax.ShapeDtypeStruct((B, R, 128), x.dtype),
        grid_spec=pltpu.PrefetchScalarGridSpec(
            num_scalar_prefetch=0,
            grid=grid,
            in_specs=[
                pl.BlockSpec((bB, tR, 128), lambda r, b: (b, r, 0)),
                pl.BlockSpec((tR, 128), lambda r, b: (r, 0)),
            ],
            out_specs=pl.BlockSpec((bB, tR, 128), lambda r, b: (b, r, 0)),
        ),
        compiler_params=pltpu.CompilerParams(
            dimension_semantics=("parallel", "parallel"),
            vmem_limit_bytes=vmem_limit,
        ),
        input_output_aliases=alias,
    )(x_r, pe_r)

    out = out.reshape(B, F_pad)
    if F_pad != F:
        out = out[:, :F]
    return out.reshape(B, S, D)


if __name__ == "__main__":
    # Small shapes consistent with the module: batch=2, seq=8, d_model=32.
    B, S, D = 2, 8, 32
    max_len = 500

    key = jax.random.PRNGKey(0)
    x = jax.random.normal(key, (B, S, D), dtype=jnp.float32)
    pe_table = _build_pe_table(D, max_len)

    out = jax.block_until_ready(positional_encoding(x, pe_table))
    ref = x + pe_table[None, :S, :]
    assert out.shape == (B, S, D)
    assert jnp.allclose(out, ref, atol=1e-6), "mismatch vs reference (lane-dense path)"

    # Exercise the padded path (S*D not a multiple of 128).
    S2, D2 = 7, 10
    pe_table2 = _build_pe_table(D2, max_len)
    x2 = jax.random.normal(jax.random.PRNGKey(1), (B, S2, D2), dtype=jnp.float32)
    out2 = jax.block_until_ready(positional_encoding(x2, pe_table2))
    ref2 = x2 + pe_table2[None, :S2, :]
    assert out2.shape == (B, S2, D2)
    assert jnp.allclose(out2, ref2, atol=1e-6), "mismatch vs reference (padded path)"

    print("KERNEL_OK")
</pallas_src>

<mosaic_0001>
module attributes {stable_mosaic.version = 11 : i64} {
  func.func @_pe_add_kernel(%arg0: i32, %arg1: i32, %arg2: memref<2x2x128xf32, #tpu.memory_space<vmem>>, %arg3: memref<2x128xf32, #tpu.memory_space<vmem>>, %arg4: memref<2x2x128xf32, #tpu.memory_space<vmem>>) attributes {dimension_semantics = [#tpu.dimension_semantics<parallel>, #tpu.dimension_semantics<parallel>], iteration_bounds = array<i64: 1, 1>, scalar_prefetch = 0 : i64, scratch_operands = 0 : i64, tpu.core_type = #tpu.core_type<tc>, window_params = [{transform_indices = @transform_0, window_bounds = array<i64: 2, 2, 128>}, {transform_indices = @transform_1, window_bounds = array<i64: 2, 128>}, {transform_indices = @transform_2, window_bounds = array<i64: 2, 2, 128>}]} {
    %c0 = arith.constant 0 : index
    %c0_0 = arith.constant 0 : index
    %c0_1 = arith.constant 0 : index
    %0 = vector.load %arg2[%c0, %c0_0, %c0_1] : memref<2x2x128xf32, #tpu.memory_space<vmem>>, vector<2x2x128xf32>
    %c0_2 = arith.constant 0 : index
    %c0_3 = arith.constant 0 : index
    %1 = vector.load %arg3[%c0_2, %c0_3] : memref<2x128xf32, #tpu.memory_space<vmem>>, vector<2x128xf32>
    %2 = vector.shape_cast %1 : vector<2x128xf32> to vector<1x2x128xf32>
    %3 = vector.broadcast %2 : vector<1x2x128xf32> to vector<2x2x128xf32>
    %4 = arith.addf %0, %3 : vector<2x2x128xf32>
    %c0_4 = arith.constant 0 : index
    %c0_5 = arith.constant 0 : index
    %c0_6 = arith.constant 0 : index
    %5 = vector.load %arg4[%c0_4, %c0_5, %c0_6] : memref<2x2x128xf32, #tpu.memory_space<vmem>>, vector<2x2x128xf32>
    tpu.vector_store %arg4[%c0_4, %c0_5, %c0_6], %4 {strides = array<i32>} : memref<2x2x128xf32, #tpu.memory_space<vmem>>, vector<2x2x128xf32>,
    return
  }
  func.func @transform_0(%arg0: i32, %arg1: i32) -> (i32, i32, i32) {
    %c0_i32 = arith.constant 0 : i32
    %c0_i32_0 = arith.constant 0 : i32
    return %arg1, %arg0, %c0_i32 : i32, i32, i32
  }
  func.func @transform_1(%arg0: i32, %arg1: i32) -> (i32, i32) {
    %c0_i32 = arith.constant 0 : i32
    %c0_i32_0 = arith.constant 0 : i32
    return %arg0, %c0_i32 : i32, i32
  }
  func.func @transform_2(%arg0: i32, %arg1: i32) -> (i32, i32, i32) {
    %c0_i32 = arith.constant 0 : i32
    %c0_i32_0 = arith.constant 0 : i32
    return %arg1, %arg0, %c0_i32 : i32, i32, i32
  }
}

</mosaic_0001>

<bundles_post_ra>
// kernel: tpu_custom_call.1
= control target key start
LH: loop header
LB: loop body
LE: loop exit
PB: predicated region body
PF: predicated region fallthrough
CT: control target
= control target key end

     0   :  { %7 = vsyncpa [#allocation3], 0  ;;  %s169_s0 = inlined_call_operand.hbm [shape: f32[2,2,128], index: 0, kind: input, shape index: {}]   ;;  %s170_s1 = inlined_call_operand.hbm [shape: f32[2,128], index: 1, kind: input, shape index: {}]   ;;  %s171_s2 = inlined_call_operand.hbm [shape: f32[2,2,128], index: 2, kind: output, shape index: {}]  }
   0x1   :  { %8 = vsyncpa [#allocation6], 0 }
   0x2   :  { %9 = vsyncpa [#allocation4], 0  ;;  %s134_s9 = smov [#allocation2]  }
   0x3   :  { %s15_s10 = sshll.u32 %s134_s9, 4  ;;  %s16_s10 = int_to_ptr.vmem [resolvable:$true] %s15_s10 }
   0x4   :  { %s76_s11 = scalar_lea.vmem %s16_s10, 64  ;;  %p81_p1 = scmp.lt.s32.totalorder %s16_s10, %s16_s10 }
   0x5   :  { %p77_p0 = scmp.ne.s32.totalorder %s16_s10, %s76_s11  ;;  %p82_p2 = scmp.lt.s32.totalorder %s76_s11, %s76_s11 }
   0x7   :  { %p83_p3 = por %p82_p2, %p81_p1 }
   0x9   :  { %p84_p4 = pnand %p83_p3, %p77_p0 }
   0xb   :  { %87 = shalt.err (!%p84_p4)
}
   0xc   :  { %s135_s12 = smov 32   ;;  %s136_s13 = smov 2  }
   0xd   :  { %21 = dma.hbm_to_vmem [thread:$0]  %s169_s0, 64, %s16_s10, [#allocation3], %s135_s12, %s135_s12, %s136_s13  }
   0xe   :  { %s137_s16 = smov [#allocation5]  }
   0xf   :  { %s28_s17 = sshll.u32 %s137_s16, 4  ;;  %s29_s17 = int_to_ptr.vmem [resolvable:$true] %s28_s17 }
  0x10   :  { %s96_s18 = scalar_lea.vmem %s29_s17, 32  ;;  %p101_p6 = scmp.lt.s32.totalorder %s29_s17, %s29_s17 }
  0x11   :  { %p97_p5 = scmp.ne.s32.totalorder %s29_s17, %s96_s18  ;;  %p102_p7 = scmp.lt.s32.totalorder %s96_s18, %s96_s18 }
  0x13   :  { %p103_p8 = por %p102_p7, %p101_p6 }
  0x15   :  { %p104_p9 = pnand %p103_p8, %p97_p5 }
  0x17   :  { %107 = shalt.err (!%p104_p9)
}
  0x18   :  { %31 = dma.hbm_to_vmem [thread:$0]  %s170_s1, 32, %s29_s17, [#allocation6]  }
  0x19   :  { %128 = dma.done.wait [#allocation3], 64  }
  0x1a   :  { %129 = vsyncadd [#allocation3], 4294967232 }
  0x1b   :  { %130 = dma.done.wait [#allocation6], 32  }
  0x1c   :  { %131 = vsyncadd [#allocation6], 4294967264  ;;  %s138_s21 = smov [#allocation7]   ;;  %v38_v0 = vld [vmem:[#allocation2] sm:$0x3] }
  0x1d   :  { %s50_s0 = sshll.u32 %s138_s21, 4  ;;  %v40_v1 = vld [vmem:[#allocation5] sm:$0x3]  ;;  %v39_v2 = vld [vmem:[#allocation2 + $0x2] sm:$0x3]  ;;  %s51_s0 = int_to_ptr.vmem [resolvable:$true] %s50_s0 }
  0x1e   :  { %v41_v3 = vadd.f32 %v40_v1, %v38_v0  ;;  %v42_v4 = vadd.f32 %v40_v1, %v39_v2  ;;  %s108_s22 = scalar_lea.vmem %s51_s0, 64  ;;  %p113_p11 = scmp.lt.s32.totalorder %s51_s0, %s51_s0 }
  0x1f   :  { %p109_p10 = scmp.ne.s32.totalorder %s51_s0, %s108_s22  ;;  %p114_p12 = scmp.lt.s32.totalorder %s108_s22, %s108_s22 }
  0x20   :  { %43 = vst [vmem:[#allocation7] sm:$0x3] %v41_v3  ;;  %44 = vst [vmem:[#allocation7 + $0x2] sm:$0x3] %v42_v4 }
  0x21   :  { %p115_p13 = por %p114_p12, %p113_p11 }
  0x23   :  { %p116_p0 = pnand %p115_p13, %p109_p10 }
  0x25   :  { %119 = shalt.err (!%p116_p0)
}
  0x26   :  { %56 = dma.vmem_to_hbm [thread:$0]  %s51_s0, 64, %s171_s2, [#allocation4], %s135_s12, %s135_s12, %s136_s13  }
  0x27   :  { %132 = dma.done.wait [#allocation4], 64  }
  0x28   :  { %133 = vsyncadd [#allocation4], 4294967232 }
  0x29   :  { %60 = vsyncpa [#allocation3], 1 }
  0x2a   :  { %61 = vsyncpa [#allocation6], 1 }
  0x2b   :  { %62 = vsyncpa [#allocation4], 1 }

</bundles_post_ra>
